<compile_context>
chip_gen: v7x
topology: tpu7x:2x2x1
jax: 0.10.0
libtpu: 0.0.40
codegen_flags: <defaults>
</compile_context>

<pallas_src>
import functools

import jax
import jax.numpy as jnp
from jax.experimental import pallas as pl
from jax.experimental.pallas import tpu as pltpu


def _cdiv(a, b):
    return (a + b - 1) // b


def _round_up(a, b):
    return _cdiv(a, b) * b


def _vmem_capacity_bytes():
    """Physical VMEM of the local TPU generation (conservative fallback)."""
    try:
        return int(pltpu.get_tpu_info().vmem_capacity_bytes)
    except Exception:
        return 64 * 1024 * 1024   # v7x per-TC physical VMEM; safe everywhere.


def _pick_tile(hw, c, itemsize, target_bytes):
    """Pick an HW tile (multiple of 128 lanes) near target_bytes per block.

    Scans 128-multiples <= max_lanes and minimizes (grid steps, last-tile
    waste). Partial edge blocks are handled in-kernel, so no physical padding
    of x is ever created.
    """
    hw128 = _round_up(hw, 128)
    max_lanes = max(128, (target_bytes // max(1, c * itemsize)) // 128 * 128)
    max_lanes = min(max_lanes, hw128)
    best_tile, best_key = 128, None
    for t in range(128, max_lanes + 1, 128):
        n = _cdiv(hw, t)
        waste = n * t - hw
        key = (n, waste)
        if best_key is None or key < best_key:
            best_key, best_tile = key, t
    return best_tile, _cdiv(hw, best_tile)


def _channel_mlp(avg, mx, w1, w2):
    """Shared MLP + sigmoid on pooled stats.  avg/mx: (C, 1) f32 -> (C, 1) f32.

    relu is elementwise, so running the two pooled vectors as the two columns
    of one (C, 2) matmul is exactly fc(avg) + fc(max).
    """
    pooled = jnp.concatenate([avg, mx], axis=1)                    # (C, 2)
    hdn = jnp.dot(w1.astype(jnp.float32), pooled,
                  preferred_element_type=jnp.float32)              # (C_red, 2)
    hdn = jnp.maximum(hdn, 0.0)
    fc = jnp.dot(w2.astype(jnp.float32), hdn,
                 preferred_element_type=jnp.float32)               # (C, 2)
    return jax.nn.sigmoid(fc[:, 0:1] + fc[:, 1:2])                 # (C, 1)


# ---------------------------------------------------------------------------
# Fused single-pass kernel (slab-resident): pool + MLP + sigmoid + apply.
# ---------------------------------------------------------------------------
def _fused_kernel(x_ref, w1_ref, w2_ref, o_ref, *, hw_true):
    # x_ref/o_ref: (C, HW) full slab of one batch element (block == full dims).
    x = x_ref[...]                                   # native dtype
    xf = x.astype(jnp.float32)
    avg = jnp.sum(xf, axis=1, keepdims=True) / jnp.float32(hw_true)   # (C, 1)
    mx = jnp.max(xf, axis=1, keepdims=True)                           # (C, 1)
    scale = _channel_mlp(avg, mx, w1_ref[...], w2_ref[...])           # (C, 1)
    # Native-dtype multiply (no f32 round trip on the big tensor).
    o_ref[...] = x * scale.astype(x.dtype)


# ---------------------------------------------------------------------------
# Streaming pass 1: pooled stats + shared MLP -> per-channel scale (N, C, 1).
# ---------------------------------------------------------------------------
def _pool_mlp_kernel(x_ref, w1_ref, w2_ref, scale_ref, sum_ref, max_ref,
                     *, hw_true, tile, n_hw):
    # x_ref    : (C, tile)   current HW tile of one batch element
    # w1_ref   : (C_red, C)  first 1x1-conv weight  (out, in)
    # w2_ref   : (C, C_red)  second 1x1-conv weight (out, in)
    # scale_ref: (C, 1) f32  per-channel sigmoid scale, written on last tile
    # sum_ref / max_ref: (C, 1) f32 running spatial sum / max
    h = pl.program_id(1)
    last = n_hw - 1
    valid_last = hw_true - last * tile     # in-bounds lanes of the final tile
    ragged = valid_last != tile            # static Python bool

    @pl.when(h == 0)
    def _():
        sum_ref[...] = jnp.zeros_like(sum_ref)
        max_ref[...] = jnp.full_like(max_ref, -jnp.inf)

    def accumulate(mask_tail):
        x = x_ref[...].astype(jnp.float32)         # accumulate in f32
        if mask_tail:
            # The final partial block's out-of-bounds lanes hold unspecified
            # data (no wrapper-level zero padding): mask them out of BOTH the
            # sum and the max.
            lane = jax.lax.broadcasted_iota(jnp.int32, x.shape, 1)
            valid = lane < valid_last
            xs = jnp.where(valid, x, 0.0)
            xm = jnp.where(valid, x, -jnp.inf)
        else:
            xs = x
            xm = x
        sum_ref[...] += jnp.sum(xs, axis=1, keepdims=True)
        max_ref[...] = jnp.maximum(max_ref[...],
                                   jnp.max(xm, axis=1, keepdims=True))

    if ragged:
        # Mask only on the last tile; steady-state tiles stay HBM-bound.
        @pl.when(h < last)
        def _():
            accumulate(False)

        @pl.when(h == last)
        def _():
            accumulate(True)
    else:
        accumulate(False)

    @pl.when(h == last)
    def _():
        avg = sum_ref[...] / jnp.float32(hw_true)          # true-HW mean
        scale_ref[...] = _channel_mlp(avg, max_ref[...], w1_ref[...],
                                      w2_ref[...]).astype(scale_ref.dtype)


# ---------------------------------------------------------------------------
# Streaming pass 2: lane-dense broadcast multiply in native dtype.
# ---------------------------------------------------------------------------
def _apply_kernel(x_ref, s_ref, o_ref):
    # x_ref: (C, tile); s_ref: (C, 1) f32; o_ref: (C, tile)
    o_ref[...] = x_ref[...] * s_ref[...].astype(o_ref.dtype)


def channel_attention(x_nchw, w1, w2, *, target_block_bytes=None,
                      max_fused_slab_bytes=None):
    """CBAM ChannelAttention forward.

    x_nchw: (N, C, H, W); w1: (C//r, C); w2: (C, C//r) (1x1 conv weights, no
    bias).  Returns sigmoid(fc(avgpool(x)) + fc(maxpool(x))) * x, same
    shape/dtype as x.

    target_block_bytes / max_fused_slab_bytes default to generation-aware
    values; they are exposed mainly to force specific code paths in tests.
    """
    N, C, H, W = x_nchw.shape
    HW = H * W
    C_red = w1.shape[0]
    x_bytes = jnp.dtype(x_nchw.dtype).itemsize
    w_bytes = jnp.dtype(w1.dtype).itemsize
    w_total = (C_red * C + C * C_red) * w_bytes

    cap = _vmem_capacity_bytes()
    reserve = 16 * 1024 * 1024
    usable = max(cap - reserve, 16 * 1024 * 1024)
    margin = 8 * 1024 * 1024                 # compiler-internal scratch etc.

    x = x_nchw.reshape(N, C, HW)             # free (metadata-only) reshape

    # ---- fused single-pass fast path -------------------------------------
    slab = C * HW * x_bytes
    slab_f32 = C * HW * 4
    # 2x double-buffered in + 2x double-buffered out + f32 temps + weights.
    fused_need = 4 * slab + 2 * slab_f32 + 4 * w_total + margin
    fits = fused_need <= cap - 8 * 1024 * 1024
    if max_fused_slab_bytes is None:
        use_fused = fits
    else:
        use_fused = fits and slab <= max_fused_slab_bytes

    if use_fused:
        fused_vmem = min(cap, max(fused_need, 16 * 1024 * 1024))
        out = pl.pallas_call(
            functools.partial(_fused_kernel, hw_true=HW),
            out_shape=jax.ShapeDtypeStruct((N, C, HW), x_nchw.dtype),
            grid_spec=pltpu.PrefetchScalarGridSpec(
                num_scalar_prefetch=0,
                grid=(N,),
                in_specs=[
                    pl.BlockSpec((pl.Squeezed(), C, HW), lambda n: (n, 0, 0)),
                    pl.BlockSpec((C_red, C), lambda n: (0, 0)),
                    pl.BlockSpec((C, C_red), lambda n: (0, 0)),
                ],
                out_specs=pl.BlockSpec((pl.Squeezed(), C, HW),
                                       lambda n: (n, 0, 0)),
            ),
            compiler_params=pltpu.CompilerParams(
                dimension_semantics=("parallel",),
                vmem_limit_bytes=int(fused_vmem)),
        )(x, w1, w2)
        return out.reshape(N, C, H, W)

    # ---- streaming two-pass path ------------------------------------------
    if target_block_bytes is None:
        pool_target = min(usable // 3, 16 * 1024 * 1024)    # pass 1: 2 bufs
        apply_target = min(usable // 4, 12 * 1024 * 1024)   # pass 2: 4 bufs
    else:
        pool_target = apply_target = int(target_block_bytes)

    tile1, n_hw1 = _pick_tile(HW, C, x_bytes, pool_target)
    tile2, n_hw2 = _pick_tile(HW, C, x_bytes, apply_target)

    blk1 = C * tile1 * x_bytes
    blk2 = C * tile2 * x_bytes
    pool_vmem = min(cap, max(3 * blk1 + 4 * w_total + 8 * C * 4 + margin,
                             16 * 1024 * 1024))
    apply_vmem = min(cap, max(4 * blk2 + 8 * C * 4 + margin,
                              16 * 1024 * 1024))

    pool_kernel = functools.partial(_pool_mlp_kernel, hw_true=HW, tile=tile1,
                                    n_hw=n_hw1)

    # Pass 1: pooled stats + shared MLP -> per-channel scale (N, C, 1), f32.
    scale = pl.pallas_call(
        pool_kernel,
        out_shape=jax.ShapeDtypeStruct((N, C, 1), jnp.float32),
        grid_spec=pltpu.PrefetchScalarGridSpec(
            num_scalar_prefetch=0,
            grid=(N, n_hw1),
            in_specs=[
                pl.BlockSpec((pl.Squeezed(), C, tile1), lambda n, h: (n, 0, h)),
                pl.BlockSpec((C_red, C), lambda n, h: (0, 0)),
                pl.BlockSpec((C, C_red), lambda n, h: (0, 0)),
            ],
            out_specs=pl.BlockSpec((pl.Squeezed(), C, 1), lambda n, h: (n, 0, 0)),
            scratch_shapes=[pltpu.VMEM((C, 1), jnp.float32),
                            pltpu.VMEM((C, 1), jnp.float32)],
        ),
        compiler_params=pltpu.CompilerParams(
            dimension_semantics=("parallel", "arbitrary"),
            vmem_limit_bytes=int(pool_vmem)),
    )(x, w1, w2)

    # Pass 2: lane-dense, HW-tiled scale-apply; both grid axes "parallel" so
    # both v7x TensorCores get work even at N == 1.
    out = pl.pallas_call(
        _apply_kernel,
        out_shape=jax.ShapeDtypeStruct((N, C, HW), x_nchw.dtype),
        grid_spec=pltpu.PrefetchScalarGridSpec(
            num_scalar_prefetch=0,
            grid=(N, n_hw2),
            in_specs=[
                pl.BlockSpec((pl.Squeezed(), C, tile2), lambda n, h: (n, 0, h)),
                pl.BlockSpec((pl.Squeezed(), C, 1), lambda n, h: (n, 0, 0)),
            ],
            out_specs=pl.BlockSpec((pl.Squeezed(), C, tile2),
                                   lambda n, h: (n, 0, h)),
        ),
        compiler_params=pltpu.CompilerParams(
            dimension_semantics=("parallel", "parallel"),
            vmem_limit_bytes=int(apply_vmem)),
    )(x, scale)

    return out.reshape(N, C, H, W)


def channel_attention_ref(x, w1, w2):
    # Pure-JAX reference mirroring the PyTorch forward.
    avg = jnp.mean(x, axis=(2, 3))                            # (N, C)
    mx = jnp.max(x, axis=(2, 3))                              # (N, C)

    def fc(v):  # v: (N, C)
        h = jnp.maximum(v @ w1.T, 0.0)                        # (N, C_red)
        return h @ w2.T                                       # (N, C)

    scale = jax.nn.sigmoid(fc(avg) + fc(mx))                  # (N, C)
    return scale[:, :, None, None] * x


if __name__ == "__main__":
    key = jax.random.PRNGKey(0)

    # Shapes consistent with the module: reduction=16 -> channels >= 16.
    N, C, H, W = 2, 64, 16, 16
    reduction = 16
    C_red = C // reduction

    kx, k1, k2, kx2, kx3 = jax.random.split(key, 5)
    x = jax.random.normal(kx, (N, C, H, W), dtype=jnp.float32)
    # Conv2d(.., 1, bias=False) weights -> (out, in).
    w1 = jax.random.normal(k1, (C_red, C), dtype=jnp.float32) * 0.1
    w2 = jax.random.normal(k2, (C, C_red), dtype=jnp.float32) * 0.1

    # Case 1: fused single-pass path (slab fits in VMEM), HW multiple of 128.
    out = jax.block_until_ready(channel_attention(x, w1, w2))
    ref = channel_attention_ref(x, w1, w2)
    assert out.shape == (N, C, H, W)
    assert jnp.allclose(out, ref, atol=1e-5, rtol=1e-5)

    # Case 2: fused path with HW (= 36) not a multiple of 128.
    H2, W2 = 6, 6
    x2 = jax.random.normal(kx2, (N, C, H2, W2), dtype=jnp.float32)
    out2 = jax.block_until_ready(channel_attention(x2, w1, w2))
    ref2 = channel_attention_ref(x2, w1, w2)
    assert out2.shape == (N, C, H2, W2)
    assert jnp.allclose(out2, ref2, atol=1e-5, rtol=1e-5)

    # Case 3: force the streaming two-pass path with a ragged final HW tile
    # (HW = 300 -> 128-lane tiles, last tile has 44 valid lanes).
    H3, W3 = 20, 15
    x3 = jax.random.normal(kx3, (N, C, H3, W3), dtype=jnp.float32)
    out3 = jax.block_until_ready(
        channel_attention(x3, w1, w2, max_fused_slab_bytes=0,
                          target_block_bytes=32 * 1024))
    ref3 = channel_attention_ref(x3, w1, w2)
    assert out3.shape == (N, C, H3, W3)
    assert jnp.allclose(out3, ref3, atol=1e-5, rtol=1e-5)

    # Case 4: streaming path where HW is an exact multiple of the tile
    # (exercises the unmasked multi-tile accumulation).
    out4 = jax.block_until_ready(
        channel_attention(x, w1, w2, max_fused_slab_bytes=0,
                          target_block_bytes=32 * 1024))
    assert jnp.allclose(out4, ref, atol=1e-5, rtol=1e-5)

    print("KERNEL_OK")
</pallas_src>

<mosaic_0001>
module attributes {stable_mosaic.version = 11 : i64} {
  func.func @_fused_kernel(%arg0: i32, %arg1: memref<1x64x256xf32, #tpu.memory_space<vmem>>, %arg2: memref<4x64xf32, #tpu.memory_space<vmem>>, %arg3: memref<64x4xf32, #tpu.memory_space<vmem>>, %arg4: memref<1x64x256xf32, #tpu.memory_space<vmem>>) attributes {dimension_semantics = [#tpu.dimension_semantics<parallel>], iteration_bounds = array<i64: 2>, scalar_prefetch = 0 : i64, scratch_operands = 0 : i64, tpu.core_type = #tpu.core_type<tc>, window_params = [{transform_indices = @transform_0, window_bounds = array<i64: 1, 64, 256>}, {pipeline_mode = #tpu.pipeline_mode<synchronous>, transform_indices = @transform_1, window_bounds = array<i64: 4, 64>}, {pipeline_mode = #tpu.pipeline_mode<synchronous>, transform_indices = @transform_2, window_bounds = array<i64: 64, 4>}, {transform_indices = @transform_3, window_bounds = array<i64: 1, 64, 256>}]} {
    %c0 = arith.constant 0 : index
    %c0_0 = arith.constant 0 : index
    %c0_1 = arith.constant 0 : index
    %0 = vector.load %arg1[%c0, %c0_0, %c0_1] : memref<1x64x256xf32, #tpu.memory_space<vmem>>, vector<1x64x256xf32>
    %1 = vector.shape_cast %0 : vector<1x64x256xf32> to vector<64x256xf32>
    %cst = arith.constant dense<0.000000e+00> : vector<64xf32>
    %2 = vector.multi_reduction <add>, %1, %cst [1] : vector<64x256xf32> to vector<64xf32>
    %3 = vector.shape_cast %2 : vector<64xf32> to vector<64x1xf32>
    %cst_2 = arith.constant 2.560000e+02 : f32
    %4 = vector.broadcast %cst_2 : f32 to vector<64x1xf32>
    %5 = arith.divf %3, %4 : vector<64x1xf32>
    %cst_3 = arith.constant dense<0xFF800000> : vector<64xf32>
    %6 = vector.multi_reduction <maximumf>, %1, %cst_3 [1] : vector<64x256xf32> to vector<64xf32>
    %7 = vector.shape_cast %6 : vector<64xf32> to vector<64x1xf32>
    %c0_4 = arith.constant 0 : index
    %c0_5 = arith.constant 0 : index
    %8 = vector.load %arg2[%c0_4, %c0_5] : memref<4x64xf32, #tpu.memory_space<vmem>>, vector<4x64xf32>
    %c0_6 = arith.constant 0 : index
    %c0_7 = arith.constant 0 : index
    %9 = vector.load %arg3[%c0_6, %c0_7] : memref<64x4xf32, #tpu.memory_space<vmem>>, vector<64x4xf32>
    %10 = tpu.concatenate %5, %7 in 1 : vector<64x1xf32>, vector<64x1xf32> -> vector<64x2xf32>
    %cst_8 = arith.constant dense<0.000000e+00> : vector<4x2xf32>
    %11 = tpu.matmul %8, %10, %cst_8 {dimension_numbers = #tpu.dot_dimension_numbers<[1], [0], [0], [1], [0, 0, 1, 1], [], []>} : vector<4x64xf32>, vector<64x2xf32>, vector<4x2xf32> -> vector<4x2xf32>
    %cst_9 = arith.constant 0.000000e+00 : f32
    %12 = vector.broadcast %cst_9 : f32 to vector<4x2xf32>
    %13 = arith.maximumf %11, %12 : vector<4x2xf32>
    %cst_10 = arith.constant dense<0.000000e+00> : vector<64x2xf32>
    %14 = tpu.matmul %9, %13, %cst_10 {dimension_numbers = #tpu.dot_dimension_numbers<[1], [0], [0], [1], [0, 0, 1, 1], [], []>} : vector<64x4xf32>, vector<4x2xf32>, vector<64x2xf32> -> vector<64x2xf32>
    %15 = vector.extract_strided_slice %14 {offsets = [0, 0], sizes = [64, 1], strides = [1, 1]} : vector<64x2xf32> to vector<64x1xf32>
    %16 = vector.extract_strided_slice %14 {offsets = [0, 1], sizes = [64, 1], strides = [1, 1]} : vector<64x2xf32> to vector<64x1xf32>
    %17 = arith.addf %15, %16 : vector<64x1xf32>
    %18 = arith.negf %17 : vector<64x1xf32>
    %19 = math.exp %18 : vector<64x1xf32>
    %cst_11 = arith.constant 1.000000e+00 : f32
    %20 = vector.broadcast %cst_11 : f32 to vector<64x1xf32>
    %21 = arith.addf %20, %19 : vector<64x1xf32>
    %22 = arith.divf %20, %21 : vector<64x1xf32>
    %23 = vector.broadcast %22 : vector<64x1xf32> to vector<64x256xf32>
    %24 = arith.mulf %1, %23 : vector<64x256xf32>
    %c0_12 = arith.constant 0 : index
    %c0_13 = arith.constant 0 : index
    %c0_14 = arith.constant 0 : index
    %25 = vector.load %arg4[%c0_12, %c0_13, %c0_14] : memref<1x64x256xf32, #tpu.memory_space<vmem>>, vector<1x64x256xf32>
    %26 = vector.shape_cast %25 : vector<1x64x256xf32> to vector<64x256xf32>
    %27 = vector.shape_cast %24 : vector<64x256xf32> to vector<1x64x256xf32>
    tpu.vector_store %arg4[%c0_12, %c0_13, %c0_14], %27 {strides = array<i32>} : memref<1x64x256xf32, #tpu.memory_space<vmem>>, vector<1x64x256xf32>,
    return
  }
  func.func @transform_0(%arg0: i32) -> (i32, i32, i32) {
    %c0_i32 = arith.constant 0 : i32
    %c0_i32_0 = arith.constant 0 : i32
    %c0_i32_1 = arith.constant 0 : i32
    return %arg0, %c0_i32, %c0_i32_0 : i32, i32, i32
  }
  func.func @transform_1(%arg0: i32) -> (i32, i32) {
    %c0_i32 = arith.constant 0 : i32
    %c0_i32_0 = arith.constant 0 : i32
    %c0_i32_1 = arith.constant 0 : i32
    return %c0_i32, %c0_i32_0 : i32, i32
  }
  func.func @transform_2(%arg0: i32) -> (i32, i32) {
    %c0_i32 = arith.constant 0 : i32
    %c0_i32_0 = arith.constant 0 : i32
    %c0_i32_1 = arith.constant 0 : i32
    return %c0_i32, %c0_i32_0 : i32, i32
  }
  func.func @transform_3(%arg0: i32) -> (i32, i32, i32) {
    %c0_i32 = arith.constant 0 : i32
    %c0_i32_0 = arith.constant 0 : i32
    %c0_i32_1 = arith.constant 0 : i32
    return %arg0, %c0_i32, %c0_i32_0 : i32, i32, i32
  }
}

</mosaic_0001>

<bundles_post_ra>
// kernel: tpu_custom_call.1
= control target key start
LH: loop header
LB: loop body
LE: loop exit
PB: predicated region body
PF: predicated region fallthrough
CT: control target
= control target key end

     0   :  { %8 = vsyncpa [#allocation3], 0  ;;  %s1377_s0 = inlined_call_operand.hbm [shape: f32[2,64,256], index: 0, kind: input, shape index: {}]   ;;  %s1378_s1 = inlined_call_operand.vmem [shape: f32[4,64], index: 1, kind: input, shape index: {}]   ;;  %s1379_s2 = inlined_call_operand.vmem [shape: f32[64,4], index: 2, kind: input, shape index: {}]   ;;  %s1380_s3 = inlined_call_operand.hbm [shape: f32[2,64,256], index: 3, kind: output, shape index: {}]  }
   0x1   :  { %10 = vsyncpa [#allocation3 + $0x1], 0 }
   0x2   :  { %11 = vsyncpa [#allocation4], 0 }
   0x3   :  { %13 = vsyncpa [#allocation4 + $0x1], 0  ;;  %s1051_s12 = smov 0   ;;  %s1053_s13 = smov 0  }
   0x4   :  { %s1055_s14 = smov 0   ;;  %s1057_s15 = smov 0  }
   0x5 LB: > { %s1072_s16 = sadd.s32 4294967295, %s1018_s15   ;;  %s736_s17 = sadd.s32 4294967294, %s1018_s15   ;;  %s1018_s15 = sphi %s1057_s15, %s1393_s15   ;;  %s1014_s14 = sphi %s1055_s14, %s1392_s14   ;;  %s1010_s13 = sphi %s1053_s13, %s1391_s13   ;;  %s1006_s12 = sphi %s1051_s12, %s1390_s12  }
   0x6   : > { %s1076_s18 = sadd.s32 1, %s1018_s15   ;;  %s26_s19 = sadd.s32 1, %s1014_s14 }
   0x7   : > { %s23_s20 = ssub.s32 %s1018_s15, %s1076_s18  ;;  %p33_p0 = scmp.ne.s32.totalorder %s1014_s14, %s1010_s13 }
   0x8   : > { %p24_p1 = scmp.eq.s32.totalorder %s23_s20, 0  ;;  %p34_p2 = scmp.eq.s32.totalorder %s1018_s15, 0 }
   0x9   : > { %p39_p3 = scmp.ne.s32.totalorder %s1010_s13, %s1006_s12  ;;  %p40_p4 = scmp.eq.s32.totalorder %s1072_s16, 0 }
   0xa   : > { %s1088_s21 = scalar_select %p24_p1, %s1014_s14, %s26_s19  }
   0xb   : > { %p1090_p5 = por %p34_p2, %p33_p0  ;;  %p1094_p6 = por %p40_p4, %p39_p3 }
   0xc   : > { %p105_p7 = scmp.eq.s32.totalorder %s1072_s16, 1  ;;  %p111_p8 = scmp.eq.s32.totalorder %s736_s17, 1 }
   0xd   : > { %p845_p10 = scmp.lt.s32.totalorder %s1018_s15, 2  ;;  %s137_s26 = sand.u32 1, %s1014_s14  }
   0xe   : > { %p1101_p11 = por %p105_p7, %p33_p0  ;;  %p1105_p12 = por %p111_p8, %p39_p3 }
   0xf   : > { %s768_s27 = sshll.u32 %s1018_s15, 11  ;;  %s739_s28 = sshll.u32 %s137_s26, 7 }
  0x10   : > { %s1384_s24 = scalar_select %p1101_p11, 1, 0 }
  0x11   : > { %s1385_s25 = scalar_select %p1105_p12, 1, 0 }
  0x12   : > { %s1114_s4 = scalar_lea.hbm %s1377_s0, %s768_s27  ;;  %s141_s5 = scalar_lea.vmem [#allocation2], %s739_s28 }
  0x13   : > { %s148_s6 = sshll.u32 %s141_s5, 4  ;;  %p1118_p13 = pnand %p845_p10, %p1090_p5  ;;  %s1122_s6 = int_to_ptr.vmem [resolvable:$true] %s148_s6 }
  0x14   : > { %s1124_s8 = scalar_lea.sflag [#allocation3], %s137_s26  ;;  %s922_s9 = scalar_lea.hbm %s1114_s4, 2048 }
  0x15   : > { %p923_p0 = scmp.ne.s32.totalorder %s1114_s4, %s922_s9  ;;  %p924_p1 = pneg %p1118_p13 }
  0x16   : > { %s927_s17 = scalar_lea.hbm %s1377_s0, 4096  ;;  %p928_p4 = scmp.lt.u32.totalorder %s1114_s4, %s1377_s0 }
  0x17   : > { %p925_p2 = pnand %p924_p1, %p923_p0  ;;  %p929_p5 = scmp.lt.u32.totalorder %s927_s17, %s922_s9 }
  0x18   : > { %p931_p8 = scmp.lt.u32.totalorder %s922_s9, %s1114_s4 }
  0x19   : > { %p926_p3 = pneg %p925_p2  ;;  %p930_p7 = por %p929_p5, %p928_p4 }
  0x1b   : > { %p932_p10 = por %p931_p8, %p930_p7 }
  0x1d   : > { %p933_p9 = pnand %p932_p10, %p926_p3 }
  0x1f   : > { %936 = shalt.err (!%p933_p9)
}
  0x20   : > { %s937_s22 = scalar_lea.vmem %s1122_s6, 2048  ;;  %s1020_s26 = smov [#allocation2]  }
  0x21   : > { %p938_p0 = scmp.ne.s32.totalorder %s1122_s6, %s937_s22  ;;  %s942_s27 = sshll.u32 %s1020_s26, 4  ;;  %s943_s27 = int_to_ptr.vmem [resolvable:$false] %s942_s27 }
  0x22   : > { %s944_s28 = scalar_lea.vmem %s943_s27, 4096  ;;  %p945_p11 = scmp.lt.s32.totalorder %s1122_s6, %s943_s27 }
  0x23   : > { %p940_p2 = pnand %p938_p0, %p924_p1  ;;  %p946_p4 = scmp.lt.s32.totalorder %s944_s28, %s937_s22 }
  0x25   : > { %p941_p12 = pneg %p940_p2  ;;  %p947_p5 = por %p946_p4, %p945_p11 }
  0x27   : > { %p948_p7 = pnand %p947_p5, %p941_p12 }
  0x29   : > { %951 = shalt.err (!%p948_p7)
}
  0x2a   : > { %s1021_s29 = smov 256   ;;  %s1022_s30 = smov 16  }
  0x2b   : > { %840 = dma.hbm_to_vmem [thread:$0]  (!%p1118_p13), %s1114_s4, 2048, %s1122_s6, %s1124_s8, %s1021_s29, %s1021_s29, %s1022_s30  }
  0x2c   : > { %p742_p9 = scmp.ge.s32.totalorder %s1018_s15, 1  ;;  %p156_p1 = scmp.lt.s32.totalorder %s1018_s15, 3 }
  0x2e   : > { %p157_p3 = pnand %p742_p9, %p156_p1 }
  0x2f   : > { %s1155_s5 = sand.u32 (!%p157_p3), 1, %s1010_s13  }
  0x30   : > { %160 = sbr.rel (%p157_p3) target bundleno = 968 (0x3c8), region = 32  ;;  %s743_s9 = sshll.u32 (!%p157_p3), %s1155_s5, 7 }
  0x31   : > { %s163_s10 = scalar_lea.sflag (!%p157_p3), [#allocation3], %s1155_s5  ;;  %s1161_s11 = scalar_lea.vmem (!%p157_p3), [#allocation2], %s743_s9 }
  0x37   : > { %997 = dma.done.wait (%p1094_p6), %s163_s10, 2048  }
  0x38   : > { %999 = vsyncadd (%p1094_p6), %s163_s10, 4294965248  ;;  %v1168_v0 = vld [vmem:[%s1161_s11] sm:$0xff]  ;;  %v1171_v1 = vld [vmem:[%s1161_s11 + $0x8] sm:$0xff]  ;;  %v1023_v30 = vmov 0.0|0.0   ;;  %vm1024_vm0 = vmmov 0   ;;  %v1025_v33 = vmov 0.0  }
  0x39   : > { %v1174_v2 = vld [vmem:[%s1161_s11 + $0x10] sm:$0xff]  ;;  %v238_v3 = vmax.f32 %v1168_v0, %v1171_v1  ;;  %v205_v4 = vadd.f32 %v1171_v1, %v1168_v0  ;;  %v1181_v5 = vld [vmem:[%s1161_s11 + $0x18] sm:$0xff]  ;;  %v1194_v10 = vld [vmem:[%s1161_s11 + $0x20] sm:$0xff]  ;;  %821 = vmatprep.subr.bf16.mxu0 %v1023_v30  ;;  %804 = vmatprep.mubr.msk.f32.mxu0 %vm1024_vm0, %v1025_v33  ;;  %vm271_vm1 = vcmask 7168   ;;  %vm280_vm2 = vcmask 523264   ;;  %s1026_s6 = smov 127  }
  0x3a   : > { %v241_v6 = vmax.f32 %v1174_v2, %v1181_v5  ;;  %v208_v7 = vadd.f32 %v1181_v5, %v1174_v2  ;;  %v1188_v8 = vld [vmem:[%s1161_s11 + $0x30] sm:$0xff]  ;;  %v1191_v9 = vld [vmem:[%s1161_s11 + $0x38] sm:$0xff]  ;;  %v1197_v11 = vld [vmem:[%s1161_s11 + $0x28] sm:$0xff]  ;;  %vm355_vm3 = vcmask 31744   ;;  %vm380_vm4 = vcmask 1043456   ;;  %s1296_s7 = scalar_lea.vmem [#allocation5], %s743_s9 }
  0x3b   : > { %239 = vmax.xlane.f32.xlu1 %v238_v3  ;;  %206 = vadd.xlane.f32.xlu0 %v205_v4  ;;  %v214_v12 = vadd.f32 %v1191_v9, %v1188_v8  ;;  %v211_v13 = vadd.f32 %v1197_v11, %v1194_v10  ;;  %v247_v14 = vmax.f32 %v1188_v8, %v1191_v9  ;;  %v1208_v16 = vld [vmem:[%s1161_s11 + $0x50] sm:$0xff]  ;;  %v1211_v17 = vld [vmem:[%s1161_s11 + $0x58] sm:$0xff]  ;;  %v1214_v18 = vld [vmem:[%s1161_s11 + $0x40] sm:$0xff]  ;;  %s769_s9 = sshll.u32 %s1072_s16, 11  ;;  %s663_s8 = sshll.u32 %s1296_s7, 4  ;;  %s1325_s8 = int_to_ptr.vmem [resolvable:$true] %s663_s8 }
  0x3c   : > { %v244_v15 = vmax.f32 %v1194_v10, %v1197_v11  ;;  %v1217_v19 = vld [vmem:[%s1161_s11 + $0x48] sm:$0xff]  ;;  %v220_v20 = vadd.f32 %v1211_v17, %v1208_v16  ;;  %v253_v22 = vmax.f32 %v1208_v16, %v1211_v17  ;;  %v1228_v24 = vld [vmem:[%s1161_s11 + $0x70] sm:$0xff]  ;;  %v1231_v25 = vld [vmem:[%s1161_s11 + $0x78] sm:$0xff]  ;;  %s1323_s20 = scalar_lea.hbm %s1380_s3, %s769_s9  ;;  %s650_s16 = scalar_lea.sflag [#allocation4], %s1155_s5 }
  0x3d   : > { %v217_v21 = vadd.f32 %v1217_v19, %v1214_v18  ;;  %v250_v23 = vmax.f32 %v1214_v18, %v1217_v19  ;;  %v1234_v26 = vld [vmem:[%s1161_s11 + $0x60] sm:$0xff]  ;;  %v1237_v27 = vld [vmem:[%s1161_s11 + $0x68] sm:$0xff]  ;;  %v226_v28 = vadd.f32 %v1231_v25, %v1228_v24  ;;  %v259_v31 = vmax.f32 %v1228_v24, %v1231_v25  ;;  %v270_v33 = vld [vmem:[%s1379_s2 + $0x38] sm:$0xff]  ;;  %s952_s22 = scalar_lea.vmem %s1325_s8, 2048  ;;  %p1387_p11 = scmp.ne.s32.totalorder %s1384_s24, 0 }
  0x3e   : > { %v223_v29 = vadd.f32 %v1237_v27, %v1234_v26  ;;  %v256_v32 = vmax.f32 %v1234_v26, %v1237_v27  ;;  %p953_p6 = scmp.ne.s32.totalorder %s1325_s8, %s952_s22  ;;  %s1028_s26 = smov [#allocation5]  }
  0x3f   : > { %242 = vmax.xlane.f32.xlu1 %v241_v6  ;;  %209 = vadd.xlane.f32.xlu0 %v208_v7  ;;  %s956_s27 = sshll.u32 %s1028_s26, 4  ;;  %s957_s27 = int_to_ptr.vmem [resolvable:$false] %s956_s27 }
  0x40   : > { %p954_p12 = pnand %p953_p6, %p1387_p11  ;;  %s958_s28 = scalar_lea.vmem %s957_s27, 4096 }
  0x41   : > { %p959_p8 = scmp.lt.s32.totalorder %s1325_s8, %s957_s27  ;;  %p960_p10 = scmp.lt.s32.totalorder %s958_s28, %s952_s22 }
  0x42   : > { %p955_p13 = pneg %p954_p12 }
  0x43   : > { %215 = vadd.xlane.f32.xlu1 %v214_v12  ;;  %212 = vadd.xlane.f32.xlu0 %v211_v13  ;;  %p961_p0 = por %p960_p10, %p959_p8 }
  0x45   : > { %p962_p2 = pnand %p961_p0, %p955_p13 }
  0x47   : > { %248 = vmax.xlane.f32.xlu1 %v247_v14  ;;  %245 = vmax.xlane.f32.xlu0 %v244_v15  ;;  %v262_v14 = vld [vmem:[%s1378_s1] sm:$0xf] }
  0x48   : > { %v263_v15 = vld [vmem:[%s1379_s2] sm:$0xff] }
  0x49   : > { %809 = vmatprep.mubr.msk.f32.mxu1 %vm355_vm3, %v263_v15 }
  0x4b   : > { %221 = vadd.xlane.f32.xlu1 %v220_v20  ;;  %218 = vadd.xlane.f32.xlu0 %v217_v21 }
  0x4f   : > { %254 = vmax.xlane.f32.xlu1 %v253_v22  ;;  %251 = vmax.xlane.f32.xlu0 %v250_v23  ;;  %v264_v23 = vld [vmem:[%s1379_s2 + $0x8] sm:$0xff] }
  0x53   : > { %227 = vadd.xlane.f32.xlu1 %v226_v28  ;;  %224 = vadd.xlane.f32.xlu0 %v223_v29  ;;  %v265_v28 = vld [vmem:[%s1379_s2 + $0x10] sm:$0xff]  ;;  %v266_v29 = vld [vmem:[%s1379_s2 + $0x18] sm:$0xff] }
  0x57   : > { %260 = vmax.xlane.f32.xlu1 %v259_v31  ;;  %257 = vmax.xlane.f32.xlu0 %v256_v32  ;;  %v268_v31 = vld [vmem:[%s1379_s2 + $0x28] sm:$0xff]  ;;  %v269_v32 = vld [vmem:[%s1379_s2 + $0x30] sm:$0xff] }
  0xc8   : > { %v240_v34 = vpop.xlane.xlu1 %239  ;;  %v207_v35 = vpop.xlane.xlu0 %206 }
  0xc9   : > { %v230_v36 = vmul.f32 0.00390625, %v207_v35 }
  0xcb   : > { %v272_v40 = vsel %vm271_vm1, %v230_v36, %v240_v34 }
  0xcc   : > { %v243_v37 = vpop.xlane.xlu1 %242  ;;  %v210_v38 = vpop.xlane.xlu0 %209 }
  0xcd   : > { %v231_v39 = vmul.f32 0.00390625, %v210_v38 }
  0xcf   : > { %v273_v41 = vsel %vm271_vm1, %v231_v39, %v243_v37 }
  0xd0   : > { %v216_v42 = vpop.xlane.xlu1 %215  ;;  %v213_v43 = vpop.xlane.xlu0 %212  ;;  %v822_v44 = vpack.c.bf16 %v273_v41, %v272_v40 }
  0xd1   : > { %v233_v45 = vmul.f32 0.00390625, %v216_v42  ;;  %v232_v46 = vmul.f32 0.00390625, %v213_v43  ;;  %v1027_v42 = vmov 0  }
  0xd2   : > { %823 = vmatpush3.bf16.msra.mxu0 %v822_v44  ;;  %889 = vset.pattern.permute.xlu0 %v1027_v42 }
  0xd3   : > { %824 = vmatprep.subr.bf16.mxu0 %v1023_v30  ;;  %888 = vset.pattern.permute.xlu1 %v1027_v42 }
  0xd4   : > { %v249_v47 = vpop.xlane.xlu1 %248  ;;  %v246_v48 = vpop.xlane.xlu0 %245 }
  0xd5   : > { %v275_v49 = vsel %vm271_vm1, %v233_v45, %v249_v47  ;;  %v274_v50 = vsel %vm271_vm1, %v232_v46, %v246_v48 }
  0xd6   : > { %v825_v51 = vpack.c.bf16 %v275_v49, %v274_v50 }
  0xd8   : > { %v222_v52 = vpop.xlane.xlu1 %221  ;;  %826 = vmatpush3.bf16.msra.mxu0 %v825_v51  ;;  %v219_v53 = vpop.xlane.xlu0 %218 }
  0xd9   : > { %827 = vmatprep.subr.bf16.mxu0 %v1023_v30  ;;  %v235_v54 = vmul.f32 0.00390625, %v222_v52  ;;  %v234_v55 = vmul.f32 0.00390625, %v219_v53 }
  0xdc   : > { %v255_v56 = vpop.xlane.xlu1 %254  ;;  %v252_v57 = vpop.xlane.xlu0 %251 }
  0xdd   : > { %v277_v58 = vsel %vm271_vm1, %v235_v54, %v255_v56  ;;  %v276_v59 = vsel %vm271_vm1, %v234_v55, %v252_v57 }
  0xde   : > { %v828_v60 = vpack.c.bf16 %v277_v58, %v276_v59 }
  0xe0   : > { %v228_v61 = vpop.xlane.xlu1 %227  ;;  %829 = vmatpush3.bf16.msra.mxu0 %v828_v60  ;;  %v225_v62 = vpop.xlane.xlu0 %224 }
  0xe1   : > { %830 = vmatprep.subr.bf16.mxu0 %v1023_v30  ;;  %v237_v63 = vmul.f32 0.00390625, %v228_v61  ;;  %v236_v3 = vmul.f32 0.00390625, %v225_v62  ;;  %v267_v30 = vld [vmem:[%s1379_s2 + $0x20] sm:$0xff] }
  0xe4   : > { %v261_v4 = vpop.xlane.xlu1 %260  ;;  %v258_v6 = vpop.xlane.xlu0 %257 }
  0xe5   : > { %v279_v7 = vsel %vm271_vm1, %v237_v63, %v261_v4  ;;  %v278_v12 = vsel %vm271_vm1, %v236_v3, %v258_v6 }
  0xe6   : > { %v831_v13 = vpack.c.bf16 %v279_v7, %v278_v12 }
  0xe8   : > { %832 = vmatpush3.bf16.msra.mxu0 %v831_v13 }
  0xeb   : > { %805 = vmatmul.mubr.msk.f32.vlgmr.msra.gmra.mrb[0].mxu0 %vm280_vm2, %v262_v14 }
 0x1be   : > { %v350_v20 = vpop.f32.mrb[0].mxu0 }
 0x1bf   : > { %v354_v21 = vmax.f32 %v350_v20, 0.0  ;;  %v806_v22 = vpop.f32.mrb[1].mxu0 }
 0x1c1   : > { %807 = vmatprep.subr.msk.mxu1 %vm380_vm4, %v354_v21 }
 0x1c2   : > { %808 = vmatpush3.msk.msra.mxu1 %vm380_vm4, %v354_v21 }
 0x1c3   : > { %810 = vmatmul.mubr.msk.f32.vlgmr.msra.gmra.mrb[0].mxu1 %vm355_vm3, %v264_v23 }
 0x1c4   : > { %812 = vmatprep.mubr.msk.f32.mxu1 %vm355_vm3, %v265_v28 }
 0x1c7   : > { %813 = vmatmul.mubr.msk.f32.gmra.mrb[2].mxu1 %vm355_vm3, %v266_v29 }
 0x1c8   : > { %815 = vmatprep.mubr.msk.f32.mxu1 %vm355_vm3, %v267_v30 }
 0x1cb   : > { %816 = vmatmul.mubr.msk.f32.gmra.mrb[4].mxu1 %vm355_vm3, %v268_v31 }
 0x1cc   : > { %818 = vmatprep.mubr.msk.f32.mxu1 %vm355_vm3, %v269_v32 }
 0x1cf   : > { %819 = vmatmul.mubr.msk.f32.gmra.mrb[6].mxu1 %vm355_vm3, %v270_v33 }
 0x296   : > { %v811_v34 = vpop.f32.mrb[0].mxu1 }
 0x297   : > { %499 = vrot.lane.b32.xlu1 %v811_v34, %s1026_s6  ;;  %v450_v35 = vpop.f32.mrb[1].mxu1 }
 0x298   : > { %497 = vrot.lane.b32.xlu0 %v450_v35, %s1026_s6 }
 0x29a   : > { %v814_v36 = vpop.f32.mrb[2].mxu1 }
 0x29b   : > { %503 = vrot.lane.b32.xlu1 %v814_v36, %s1026_s6  ;;  %v460_v37 = vpop.f32.mrb[3].mxu1 }
 0x29e   : > { %v817_v38 = vpop.f32.mrb[4].mxu1 }
 0x29f   : > { %501 = vrot.lane.b32.xlu1 %v460_v37, %s1026_s6  ;;  %v470_v39 = vpop.f32.mrb[5].mxu1 }
 0x2a0   : > { %505 = vrot.lane.b32.xlu0 %v470_v39, %s1026_s6 }
 0x2a2   : > { %v820_v40 = vpop.f32.mrb[6].mxu1 }
 0x2a3   : > { %507 = vrot.lane.b32.xlu1 %v817_v38, %s1026_s6  ;;  %v480_v41 = vpop.f32.mrb[7].mxu1 }
 0x2a4   : > { %509 = vrot.lane.b32.xlu0 %v480_v41, %s1026_s6 }
 0x2a7   : > { %511 = vrot.lane.b32.xlu1 %v820_v40, %s1026_s6 }
 0x309   : > { %v500_v43 = vpop.permute.xlu1 %499 }
 0x30a   : > { %v522_v44 = vadd.f32 %v811_v34, %v500_v43  ;;  %v498_v45 = vpop.permute.xlu0 %497 }
 0x30b   : > { %v521_v46 = vadd.f32 %v498_v45, %v450_v35 }
 0x30c   : > { %v756_v47 = vmul.f32 -1.442695, %v522_v44 }
 0x30d   : > { %v755_v48 = vmul.f32 -1.442695, %v521_v46  ;;  %v504_v49 = vpop.permute.xlu1 %503 }
 0x30e   : > { %890 = vpow2.f32 %v756_v47  ;;  %v524_v50 = vadd.f32 %v814_v36, %v504_v49 }
 0x30f   : > { %892 = vpow2.f32 %v755_v48 }
 0x310   : > { %v758_v51 = vmul.f32 -1.442695, %v524_v50 }
 0x311   : > { %v502_v52 = vpop.permute.xlu1 %501 }
 0x312   : > { %894 = vpow2.f32 %v758_v51  ;;  %v523_v53 = vadd.f32 %v502_v52, %v460_v37  ;;  %v506_v54 = vpop.permute.xlu0 %505 }
 0x313   : > { %v525_v55 = vadd.f32 %v506_v54, %v470_v39 }
 0x314   : > { %v757_v56 = vmul.f32 -1.442695, %v523_v53 }
 0x315   : > { %v759_v57 = vmul.f32 -1.442695, %v525_v55  ;;  %v508_v58 = vpop.permute.xlu1 %507 }
 0x316   : > { %896 = vpow2.f32 %v757_v56  ;;  %v526_v59 = vadd.f32 %v817_v38, %v508_v58  ;;  %v510_v60 = vpop.permute.xlu0 %509 }
 0x317   : > { %898 = vpow2.f32 %v759_v57  ;;  %v527_v61 = vadd.f32 %v510_v60, %v480_v41 }
 0x318   : > { %v891_v62 = vpop.eup %890  ;;  %v760_v63 = vmul.f32 -1.442695, %v526_v59 }
 0x319   : > { %v893_v3 = vpop.eup %892  ;;  %v554_v4 = vadd.f32 1.0, %v891_v62  ;;  %v761_v6 = vmul.f32 -1.442695, %v527_v61  ;;  %v512_v7 = vpop.permute.xlu1 %511 }
 0x31a   : > { %v553_v12 = vadd.f32 1.0, %v893_v3  ;;  %900 = vpow2.f32 %v760_v63  ;;  %v528_v13 = vadd.f32 %v820_v40, %v512_v7 }
 0x31b   : > { %902 = vrcp.f32 %v554_v4 }
 0x31c   : > { %v895_v14 = vpop.eup %894  ;;  %904 = vrcp.f32 %v553_v12  ;;  %v762_v15 = vmul.f32 -1.442695, %v528_v13 }
 0x31d   : > { %v556_v20 = vadd.f32 1.0, %v895_v14  ;;  %906 = vpow2.f32 %v761_v6 }
 0x31e   : > { %908 = vpow2.f32 %v762_v15 }
 0x31f   : > { %910 = vrcp.f32 %v556_v20 }
 0x320   : > { %v897_v21 = vpop.eup %896 }
 0x321   : > { %v899_v22 = vpop.eup %898  ;;  %v555_v23 = vadd.f32 1.0, %v897_v21 }
 0x322   : > { %v557_v28 = vadd.f32 1.0, %v899_v22 }
 0x323   : > { %912 = vrcp.f32 %v555_v23 }
 0x324   : > { %v901_v29 = vpop.eup %900  ;;  %914 = vrcp.f32 %v557_v28 }
 0x325   : > { %v903_v30 = vpop.eup %902  ;;  %v558_v31 = vadd.f32 1.0, %v901_v29 }
 0x326   : > { %v905_v32 = vpop.eup %904  ;;  %584 = vperm.xlu1 %888, %v903_v30  }
 0x327   : > { %v907_v33 = vpop.eup %906  ;;  %916 = vrcp.f32 %v558_v31  ;;  %579 = vperm.xlu0 %889, %v905_v32  }
 0x328   : > { %v909_v34 = vpop.eup %908  ;;  %v559_v35 = vadd.f32 1.0, %v907_v33 }
 0x329   : > { %v911_v36 = vpop.eup %910  ;;  %v560_v37 = vadd.f32 1.0, %v909_v34 }
 0x32a   : > { %918 = vrcp.f32 %v559_v35 }
 0x32b   : > { %920 = vrcp.f32 %v560_v37  ;;  %594 = vperm.xlu0 %889, %v911_v36  }
 0x32d   : > { %v913_v38 = vpop.eup %912 }
 0x32e   : > { %589 = vperm.xlu1 %888, %v913_v38   ;;  %v915_v39 = vpop.eup %914 }
 0x331   : > { %v917_v40 = vpop.eup %916 }
 0x332   : > { %599 = vperm.xlu1 %888, %v915_v39   ;;  %604 = vperm.xlu0 %889, %v917_v40  }
 0x334   : > { %v919_v41 = vpop.eup %918 }
 0x335   : > { %v921_v42 = vpop.eup %920 }
 0x336   : > { %614 = vperm.xlu0 %889, %v921_v42   ;;  %609 = vperm.xlu1 %888, %v919_v41  }
 0x3a5   : > { %v585_v43 = vpop.permute.xlu1 %584 }
 0x3a6   : > { %v619_v44 = vmul.f32 %v585_v43, %v1174_v2  ;;  %v620_v45 = vmul.f32 %v585_v43, %v1181_v5  ;;  %v580_v46 = vpop.permute.xlu0 %579 }
 0x3a7   : > { %v617_v47 = vmul.f32 %v580_v46, %v1168_v0  ;;  %v618_v48 = vmul.f32 %v580_v46, %v1171_v1 }
 0x3a8   : > { %635 = vst [vmem:[%s1296_s7 + $0x10] sm:$0xff] %v619_v44  ;;  %636 = vst [vmem:[%s1296_s7 + $0x18] sm:$0xff] %v620_v45 }
 0x3a9   : > { %633 = vst [vmem:[%s1296_s7] sm:$0xff] %v617_v47  ;;  %634 = vst [vmem:[%s1296_s7 + $0x8] sm:$0xff] %v618_v48 }
 0x3aa   : > { %v595_v2 = vpop.permute.xlu0 %594 }
 0x3ab   : > { %v623_v0 = vmul.f32 %v595_v2, %v1188_v8  ;;  %v624_v1 = vmul.f32 %v595_v2, %v1191_v9 }
 0x3ad   : > { %639 = vst [vmem:[%s1296_s7 + $0x30] sm:$0xff] %v623_v0  ;;  %640 = vst [vmem:[%s1296_s7 + $0x38] sm:$0xff] %v624_v1  ;;  %v590_v5 = vpop.permute.xlu1 %589 }
 0x3ae   : > { %v621_v49 = vmul.f32 %v590_v5, %v1194_v10  ;;  %v622_v50 = vmul.f32 %v590_v5, %v1197_v11 }
 0x3b0   : > { %637 = vst [vmem:[%s1296_s7 + $0x20] sm:$0xff] %v621_v49  ;;  %638 = vst [vmem:[%s1296_s7 + $0x28] sm:$0xff] %v622_v50 }
 0x3b1   : > { %v600_v51 = vpop.permute.xlu1 %599  ;;  %v605_v52 = vpop.permute.xlu0 %604 }
 0x3b2   : > { %v625_v8 = vmul.f32 %v600_v51, %v1214_v18  ;;  %v626_v53 = vmul.f32 %v600_v51, %v1217_v19  ;;  %v627_v9 = vmul.f32 %v605_v52, %v1208_v16  ;;  %v628_v54 = vmul.f32 %v605_v52, %v1211_v17 }
 0x3b4   : > { %641 = vst [vmem:[%s1296_s7 + $0x40] sm:$0xff] %v625_v8  ;;  %642 = vst [vmem:[%s1296_s7 + $0x48] sm:$0xff] %v626_v53 }
 0x3b5   : > { %643 = vst [vmem:[%s1296_s7 + $0x50] sm:$0xff] %v627_v9  ;;  %644 = vst [vmem:[%s1296_s7 + $0x58] sm:$0xff] %v628_v54  ;;  %v610_v10 = vpop.permute.xlu1 %609  ;;  %v615_v11 = vpop.permute.xlu0 %614 }
 0x3b6   : > { %v629_v16 = vmul.f32 %v610_v10, %v1234_v26  ;;  %v630_v17 = vmul.f32 %v610_v10, %v1237_v27  ;;  %v631_v18 = vmul.f32 %v615_v11, %v1228_v24  ;;  %v632_v19 = vmul.f32 %v615_v11, %v1231_v25 }
 0x3b8   : > { %645 = vst [vmem:[%s1296_s7 + $0x60] sm:$0xff] %v629_v16  ;;  %646 = vst [vmem:[%s1296_s7 + $0x68] sm:$0xff] %v630_v17 }
 0x3b9   : > { %647 = vst [vmem:[%s1296_s7 + $0x70] sm:$0xff] %v631_v18  ;;  %648 = vst [vmem:[%s1296_s7 + $0x78] sm:$0xff] %v632_v19 }
 0x3ba   : > { %965 = shalt.err (!%p962_p2)
}
 0x3bb   : > { %s966_s29 = scalar_lea.hbm %s1323_s20, 2048  ;;  %s970_s11 = scalar_lea.hbm %s1380_s3, 4096 }
 0x3bc   : > { %p967_p4 = scmp.ne.s32.totalorder %s1323_s20, %s966_s29  ;;  %p971_p9 = scmp.lt.u32.totalorder %s1323_s20, %s1380_s3 }
 0x3bd   : > { %p972_p1 = scmp.lt.u32.totalorder %s970_s11, %s966_s29  ;;  %p974_p6 = scmp.lt.u32.totalorder %s966_s29, %s1323_s20 }
 0x3be   : > { %p968_p5 = pnand %p967_p4, %p1387_p11 }
 0x3bf   : > { %p973_p3 = por %p972_p1, %p971_p9 }
 0x3c0   : > { %p969_p7 = pneg %p968_p5 }
 0x3c1   : > { %p975_p12 = por %p974_p6, %p973_p3 }
 0x3c3   : > { %p976_p13 = pnand %p975_p12, %p969_p7 }
 0x3c5   : > { %979 = shalt.err (!%p976_p13)
}
 0x3c6   : > { %s1029_s6 = smov 256   ;;  %s1030_s7 = smov 16  }
 0x3c7   : > { %835 = dma.vmem_to_hbm [thread:$0]  (%p1387_p11), %s1325_s8, 2048, %s1323_s20, %s650_s16, %s1029_s6, %s1029_s6, %s1030_s7  }
 0x3c8 PF: > { %s678_s9 = sand.u32 1, %s1006_s12   ;;  %p1388_p8 = scmp.ne.s32.totalorder %s1385_s25, 0 }
 0x3c9   : > { %p1389_p10 = scmp.ge.s32.totalorder %s1018_s15, 2  ;;  %s679_s17 = scalar_lea.sflag [#allocation4], %s678_s9 }
 0x3cb   : > { %p842_p0 = pnand %p1389_p10, %p1388_p8 }
 0x3cd   : > { %1001 = dma.done.wait (!%p842_p0), %s679_s17, 2048  }
 0x3ce   : > { %1003 = vsyncadd (!%p842_p0), %s679_s17, 4294965248  ;;  %p16_p2 = scmp.ge.s32.totalorder %s1076_s18, 4   ;;  %s1390_s12 = smov %s1010_s13 }
 0x3cf   : > { %s1391_s13 = smov %s1014_s14  ;;  %s1392_s14 = smov %s1088_s21 }
 0x3d0   : > { %s1393_s15 = smov %s1076_s18  ;;  %18 = sbr.rel (!%p16_p2) target bundleno = 5 (0x5), region = 77 }
 0x3d7   :  { %684 = vsyncpa [#allocation3], 1 }
 0x3d8   :  { %686 = vsyncpa [#allocation3 + $0x1], 1 }
 0x3d9   :  { %687 = vsyncpa [#allocation4], 1 }
 0x3da   :  { %689 = vsyncpa [#allocation4 + $0x1], 1 }

</bundles_post_ra>
